<compile_context>
chip_gen: v7x
topology: tpu7x:2x2x1
jax: 0.10.0
libtpu: 0.0.40
codegen_flags: <defaults>
</compile_context>

<pallas_src>
import jax
import jax.numpy as jnp
from jax.experimental import pallas as pl
from jax.experimental.pallas import tpu as pltpu

# ---------------- model hyper-parameters (small, consistent with the module) --
B = 4            # batch size
D_IN = 16        # input_dim
H = 32           # hidden_dim
NUM_LAYERS = 2   # must be >= 2 for the layer-0 input-projection fold below
NUM_HEADS = 4    # seq_len == 1 -> per-head softmax is identically 1
FF = 4 * H       # dim_feedforward (= 128)
LN_EPS = 1e-5

VEC_W = 128      # lane width of the packed bias/LN slab (== FF)
OUT_W = 128      # lane-dense output width: [:H] encoded, [H] sentiment


def _layer_norm(x, g, b):
    # Two independent reductions (mean, mean-of-squares) so the XLU pushes can
    # overlap; var = E[x^2] - E[x]^2.  f32 accumulation keeps this safe here.
    s1 = jnp.mean(x, axis=-1, keepdims=True)
    s2 = jnp.mean(x * x, axis=-1, keepdims=True)
    inv = jax.lax.rsqrt(s2 - s1 * s1 + LN_EPS)
    return (x - s1) * inv * g + b


# ----------------------------- Pallas kernel ---------------------------------
def encoder_kernel(x_ref, w0_ref, w_attn_ref, wff1_ref, wff2_ref,
                   vec_ref, fin_ref, out_ref):
    # fin slab layout: rows [0:H] = W_final (H, 128) with [:, :H] = I, [:, H] = wout
    #                  row  H     = b_final (lane H = bout, else 0)
    w_final = fin_ref[0:H, :]                 # (H, 128)
    b_final = fin_ref[H:H + 1, :]             # (1, 128)

    # vec slab layout per layer l: rows = [bias0, ln1g, ln1b, bff1, bff2, ln2g, ln2b]
    #   bias0 is b0 (input+attn fold) for l==0, b_attn for l>=1.
    def ffn_and_ln2(h, l):
        ff = jnp.dot(h, wff1_ref[l],
                     preferred_element_type=jnp.float32) + vec_ref[l, 3:4, :FF]
        ff = jnp.maximum(ff, 0.0)
        ff = jnp.dot(ff, wff2_ref[l],
                     preferred_element_type=jnp.float32) + vec_ref[l, 4:5, :H]
        return _layer_norm(h + ff, vec_ref[l, 5:6, :H], vec_ref[l, 6:7, :H])

    # ---- layer 0: input projection + (residual-folded) attention, one matmul.
    h = jnp.dot(x_ref[...], w0_ref[...],
                preferred_element_type=jnp.float32) + vec_ref[0, 0:1, :H]
    h = _layer_norm(h, vec_ref[0, 1:2, :H], vec_ref[0, 2:3, :H])
    h = ffn_and_ln2(h, 0)

    # ---- layers 1..L-1: folded attention (residual already inside the weight).
    for l in range(1, NUM_LAYERS):
        attn = jnp.dot(h, w_attn_ref[l - 1],
                       preferred_element_type=jnp.float32) + vec_ref[l, 0:1, :H]
        h = _layer_norm(attn, vec_ref[l, 1:2, :H], vec_ref[l, 2:3, :H])
        h = ffn_and_ln2(h, l)

    # combined final projection -> one lane-dense unmasked store:
    #   out[:, :H] = encoded (h), out[:, H] = sentiment (h @ wout + bout)
    out_ref[...] = jnp.dot(h, w_final,
                           preferred_element_type=jnp.float32) + b_final


# --------------------------- parameter handling -------------------------------
def init_params(key):
    """Raw (PyTorch-like, but (in, out)-transposed) parameters."""
    ks = jax.random.split(key, 16)
    s = 0.05

    def nrm(k, shape, scale=s):
        return (scale * jax.random.normal(k, shape)).astype(jnp.float32)

    return dict(
        w_in=nrm(ks[0], (D_IN, H)),
        b_in=nrm(ks[1], (H,)),
        wqkv=nrm(ks[2], (NUM_LAYERS, H, 3 * H)),       # [Q; K; V] on lanes
        bqkv=nrm(ks[3], (NUM_LAYERS, 3 * H)),
        wo=nrm(ks[4], (NUM_LAYERS, H, H)),
        bo=nrm(ks[5], (NUM_LAYERS, H)),
        ln1g=1.0 + nrm(ks[6], (NUM_LAYERS, H)),
        ln1b=nrm(ks[7], (NUM_LAYERS, H)),
        wff1=nrm(ks[8], (NUM_LAYERS, H, FF)),
        bff1=nrm(ks[9], (NUM_LAYERS, FF)),
        wff2=nrm(ks[10], (NUM_LAYERS, FF, H)),
        bff2=nrm(ks[11], (NUM_LAYERS, H)),
        ln2g=1.0 + nrm(ks[12], (NUM_LAYERS, H)),
        ln2b=nrm(ks[13], (NUM_LAYERS, H)),
        wout=nrm(ks[14], (H,)),
        bout=nrm(ks[15], ()),
    )


def pack_params(p):
    """Fold attention/residual/input-projection (exact, f32) and pack into slabs.

    VALIDITY: these folds use softmax(length-1 sequence) == 1, post-LN
    (norm_first=False) and eval-mode dropout.  Do NOT reuse for seq_len > 1.
    """
    assert NUM_LAYERS >= 2
    eye = jnp.eye(H, dtype=jnp.float32)

    wv = p["wqkv"][:, :, 2 * H:]                                   # (L, H, H)
    bv = p["bqkv"][:, 2 * H:]                                      # (L, H)
    # Residual folded into the weight: A[l] = I + Wv[l] @ Wo[l]
    a = eye[None, :, :] + jnp.einsum("lij,ljk->lik", wv, p["wo"])  # (L, H, H)
    b_attn = jnp.einsum("lj,ljk->lk", bv, p["wo"]) + p["bo"]       # (L, H)

    # Input projection folded into layer 0's attention:
    #   (x@W_in + b_in) @ A0 + b_attn0  ==  x @ (W_in@A0) + (b_in@A0 + b_attn0)
    w0 = p["w_in"] @ a[0]                                          # (D_IN, H)
    b0 = p["b_in"] @ a[0] + b_attn[0]                              # (H,)
    bias0 = jnp.concatenate([b0[None, :], b_attn[1:]], axis=0)     # (L, H)

    def pad_last(arr):  # (L, n) -> (L, VEC_W)
        return jnp.pad(arr, ((0, 0), (0, VEC_W - arr.shape[-1])))

    vec = jnp.stack([pad_last(bias0),
                     pad_last(p["ln1g"]), pad_last(p["ln1b"]),
                     pad_last(p["bff1"]), pad_last(p["bff2"]),
                     pad_last(p["ln2g"]), pad_last(p["ln2b"])],
                    axis=1).astype(jnp.float32)                    # (L, 7, VEC_W)

    w_final = (jnp.zeros((H, OUT_W), jnp.float32)
               .at[:, :H].set(eye)
               .at[:, H].set(p["wout"]))
    b_fin_row = jnp.zeros((1, OUT_W), jnp.float32).at[0, H].set(p["bout"])
    fin = jnp.concatenate([w_final, b_fin_row], axis=0)            # (H+1, OUT_W)

    return (w0.astype(jnp.float32),
            a[1:].astype(jnp.float32),          # (L-1, H, H): layers 1..L-1
            p["wff1"].astype(jnp.float32),
            p["wff2"].astype(jnp.float32),
            vec,
            fin.astype(jnp.float32))


# ------------------------------ wrapper ---------------------------------------
def _pick_batch_block(bsz, cap=1024):
    """Batch block: cap at 1024; for B >= 16 use ~B/2 (8-aligned) so the grid
    has >= 2 'parallel' steps and v7x's two TensorCores both get work."""
    if bsz <= 8:
        return bsz
    half = -(-bsz // 2)            # ceil(B/2)
    half = -(-half // 8) * 8       # round up to sublane multiple
    return min(half, cap)


@jax.jit
def transformer_audio_encoder(x, packed):
    w0, w_attn, wff1, wff2, vec, fin = packed
    bsz = x.shape[0]
    bb = _pick_batch_block(bsz)
    grid_b = pl.cdiv(bsz, bb)
    padded = grid_b * bb
    if padded != bsz:              # ragged batch: pad, slice off after the call
        x = jnp.pad(x, ((0, padded - bsz), (0, 0)))

    out = pl.pallas_call(
        encoder_kernel,
        out_shape=jax.ShapeDtypeStruct((padded, OUT_W), jnp.float32),
        grid_spec=pltpu.PrefetchScalarGridSpec(
            num_scalar_prefetch=0,
            grid=(grid_b,),
            in_specs=[
                pl.BlockSpec((bb, D_IN), lambda i: (i, 0)),
                # weights/biases: block 0 on every step -> resident across grid
                pl.BlockSpec((D_IN, H), lambda i: (0, 0)),
                pl.BlockSpec((NUM_LAYERS - 1, H, H), lambda i: (0, 0, 0)),
                pl.BlockSpec((NUM_LAYERS, H, FF), lambda i: (0, 0, 0)),
                pl.BlockSpec((NUM_LAYERS, FF, H), lambda i: (0, 0, 0)),
                pl.BlockSpec((NUM_LAYERS, 7, VEC_W), lambda i: (0, 0, 0)),
                pl.BlockSpec((H + 1, OUT_W), lambda i: (0, 0)),
            ],
            out_specs=pl.BlockSpec((bb, OUT_W), lambda i: (i, 0)),
        ),
        compiler_params=pltpu.CompilerParams(
            dimension_semantics=("parallel",)),   # shards batch across TCs on v7x
    )(x, w0, w_attn, wff1, wff2, vec, fin)

    out = out[:bsz]
    return out[:, :H], out[:, H:H + 1]


# --------------------------- pure-JAX reference --------------------------------
def reference_forward(x, p):
    """Replica of the PyTorch eval-mode forward (seq_len == 1), UNFOLDED params."""
    def ln(v, g, b):
        mu = jnp.mean(v, axis=-1, keepdims=True)
        vc = v - mu
        var = jnp.mean(vc * vc, axis=-1, keepdims=True)
        return vc * jax.lax.rsqrt(var + LN_EPS) * g + b

    h = x @ p["w_in"] + p["b_in"]
    for l in range(NUM_LAYERS):
        qkv = h @ p["wqkv"][l] + p["bqkv"][l]
        v = qkv[:, 2 * H:3 * H]
        # softmax over the single key position == 1 -> attention output == V
        attn = v @ p["wo"][l] + p["bo"][l]
        h = ln(h + attn, p["ln1g"][l], p["ln1b"][l])
        ff = jnp.maximum(h @ p["wff1"][l] + p["bff1"][l], 0.0)
        ff = ff @ p["wff2"][l] + p["bff2"][l]
        h = ln(h + ff, p["ln2g"][l], p["ln2b"][l])
    return h, h @ p["wout"][:, None] + p["bout"]


if __name__ == "__main__":
    key = jax.random.PRNGKey(0)
    k_x, k_p = jax.random.split(key)
    x = jax.random.normal(k_x, (B, D_IN), dtype=jnp.float32)

    raw_params = init_params(k_p)
    packed = pack_params(raw_params)

    encoded, sentiment = transformer_audio_encoder(x, packed)
    jax.block_until_ready((encoded, sentiment))

    assert encoded.shape == (B, H)
    assert sentiment.shape == (B, 1)

    enc_ref, sent_ref = reference_forward(x, raw_params)
    assert jnp.allclose(encoded, enc_ref, rtol=1e-3, atol=1e-3)
    assert jnp.allclose(sentiment, sent_ref, rtol=1e-3, atol=1e-3)

    print("KERNEL_OK")
</pallas_src>

<mosaic_0001>
module attributes {stable_mosaic.version = 11 : i64} {
  func.func @encoder_kernel(%arg0: i32, %arg1: memref<4x16xf32, #tpu.memory_space<vmem>>, %arg2: memref<16x32xf32, #tpu.memory_space<vmem>>, %arg3: memref<1x32x32xf32, #tpu.memory_space<vmem>>, %arg4: memref<2x32x128xf32, #tpu.memory_space<vmem>>, %arg5: memref<2x128x32xf32, #tpu.memory_space<vmem>>, %arg6: memref<2x7x128xf32, #tpu.memory_space<vmem>>, %arg7: memref<33x128xf32, #tpu.memory_space<vmem>>, %arg8: memref<4x128xf32, #tpu.memory_space<vmem>>) attributes {dimension_semantics = [#tpu.dimension_semantics<parallel>], iteration_bounds = array<i64: 1>, scalar_prefetch = 0 : i64, scratch_operands = 0 : i64, tpu.core_type = #tpu.core_type<tc>, window_params = [{transform_indices = @transform_0, window_bounds = array<i64: 4, 16>}, {pipeline_mode = #tpu.pipeline_mode<synchronous>, transform_indices = @transform_1, window_bounds = array<i64: 16, 32>}, {pipeline_mode = #tpu.pipeline_mode<synchronous>, transform_indices = @transform_2, window_bounds = array<i64: 1, 32, 32>}, {pipeline_mode = #tpu.pipeline_mode<synchronous>, transform_indices = @transform_3, window_bounds = array<i64: 2, 32, 128>}, {pipeline_mode = #tpu.pipeline_mode<synchronous>, transform_indices = @transform_4, window_bounds = array<i64: 2, 128, 32>}, {pipeline_mode = #tpu.pipeline_mode<synchronous>, transform_indices = @transform_5, window_bounds = array<i64: 2, 7, 128>}, {pipeline_mode = #tpu.pipeline_mode<synchronous>, transform_indices = @transform_6, window_bounds = array<i64: 33, 128>}, {transform_indices = @transform_7, window_bounds = array<i64: 4, 128>}]} {
    %c0 = arith.constant 0 : index
    %c0_0 = arith.constant 0 : index
    %0 = vector.load %arg7[%c0, %c0_0] : memref<33x128xf32, #tpu.memory_space<vmem>>, vector<32x128xf32>
    %c32 = arith.constant 32 : index
    %c0_1 = arith.constant 0 : index
    %1 = vector.load %arg7[%c32, %c0_1] : memref<33x128xf32, #tpu.memory_space<vmem>>, vector<1x128xf32>
    %c0_2 = arith.constant 0 : index
    %c0_3 = arith.constant 0 : index
    %2 = vector.load %arg1[%c0_2, %c0_3] : memref<4x16xf32, #tpu.memory_space<vmem>>, vector<4x16xf32>
    %c0_4 = arith.constant 0 : index
    %c0_5 = arith.constant 0 : index
    %3 = vector.load %arg2[%c0_4, %c0_5] : memref<16x32xf32, #tpu.memory_space<vmem>>, vector<16x32xf32>
    %cst = arith.constant dense<0.000000e+00> : vector<4x32xf32>
    %4 = tpu.matmul %2, %3, %cst {dimension_numbers = #tpu.dot_dimension_numbers<[1], [0], [0], [1], [0, 0, 1, 1], [], []>} : vector<4x16xf32>, vector<16x32xf32>, vector<4x32xf32> -> vector<4x32xf32>
    %c0_6 = arith.constant 0 : index
    %c0_7 = arith.constant 0 : index
    %c0_8 = arith.constant 0 : index
    %5 = vector.load %arg6[%c0_6, %c0_7, %c0_8] : memref<2x7x128xf32, #tpu.memory_space<vmem>>, vector<1x1x32xf32>
    %6 = vector.shape_cast %5 : vector<1x1x32xf32> to vector<1x32xf32>
    %7 = vector.broadcast %6 : vector<1x32xf32> to vector<4x32xf32>
    %8 = arith.addf %4, %7 : vector<4x32xf32>
    %c0_9 = arith.constant 0 : index
    %c1 = arith.constant 1 : index
    %c0_10 = arith.constant 0 : index
    %9 = vector.load %arg6[%c0_9, %c1, %c0_10] : memref<2x7x128xf32, #tpu.memory_space<vmem>>, vector<1x1x32xf32>
    %10 = vector.shape_cast %9 : vector<1x1x32xf32> to vector<1x32xf32>
    %c0_11 = arith.constant 0 : index
    %c2 = arith.constant 2 : index
    %c0_12 = arith.constant 0 : index
    %11 = vector.load %arg6[%c0_11, %c2, %c0_12] : memref<2x7x128xf32, #tpu.memory_space<vmem>>, vector<1x1x32xf32>
    %12 = vector.shape_cast %11 : vector<1x1x32xf32> to vector<1x32xf32>
    %cst_13 = arith.constant dense<0.000000e+00> : vector<4xf32>
    %13 = vector.multi_reduction <add>, %8, %cst_13 [1] : vector<4x32xf32> to vector<4xf32>
    %14 = vector.shape_cast %13 : vector<4xf32> to vector<4x1xf32>
    %cst_14 = arith.constant 3.200000e+01 : f32
    %15 = vector.broadcast %cst_14 : f32 to vector<4x1xf32>
    %16 = arith.divf %14, %15 : vector<4x1xf32>
    %17 = arith.mulf %8, %8 : vector<4x32xf32>
    %cst_15 = arith.constant dense<0.000000e+00> : vector<4xf32>
    %18 = vector.multi_reduction <add>, %17, %cst_15 [1] : vector<4x32xf32> to vector<4xf32>
    %19 = vector.shape_cast %18 : vector<4xf32> to vector<4x1xf32>
    %cst_16 = arith.constant 3.200000e+01 : f32
    %20 = vector.broadcast %cst_16 : f32 to vector<4x1xf32>
    %21 = arith.divf %19, %20 : vector<4x1xf32>
    %22 = arith.mulf %16, %16 : vector<4x1xf32>
    %23 = arith.subf %21, %22 : vector<4x1xf32>
    %cst_17 = arith.constant 9.99999974E-6 : f32
    %24 = vector.broadcast %cst_17 : f32 to vector<4x1xf32>
    %25 = arith.addf %23, %24 : vector<4x1xf32>
    %26 = math.rsqrt %25 : vector<4x1xf32>
    %27 = vector.broadcast %16 : vector<4x1xf32> to vector<4x32xf32>
    %28 = arith.subf %8, %27 : vector<4x32xf32>
    %29 = vector.broadcast %26 : vector<4x1xf32> to vector<4x32xf32>
    %30 = arith.mulf %28, %29 : vector<4x32xf32>
    %31 = vector.broadcast %10 : vector<1x32xf32> to vector<4x32xf32>
    %32 = arith.mulf %30, %31 : vector<4x32xf32>
    %33 = vector.broadcast %12 : vector<1x32xf32> to vector<4x32xf32>
    %34 = arith.addf %32, %33 : vector<4x32xf32>
    %c0_18 = arith.constant 0 : index
    %c0_19 = arith.constant 0 : index
    %c0_20 = arith.constant 0 : index
    %35 = vector.load %arg4[%c0_18, %c0_19, %c0_20] : memref<2x32x128xf32, #tpu.memory_space<vmem>>, vector<1x32x128xf32>
    %36 = vector.shape_cast %35 : vector<1x32x128xf32> to vector<32x128xf32>
    %cst_21 = arith.constant dense<0.000000e+00> : vector<4x128xf32>
    %37 = tpu.matmul %34, %36, %cst_21 {dimension_numbers = #tpu.dot_dimension_numbers<[1], [0], [0], [1], [0, 0, 1, 1], [], []>} : vector<4x32xf32>, vector<32x128xf32>, vector<4x128xf32> -> vector<4x128xf32>
    %c0_22 = arith.constant 0 : index
    %c3 = arith.constant 3 : index
    %c0_23 = arith.constant 0 : index
    %38 = vector.load %arg6[%c0_22, %c3, %c0_23] : memref<2x7x128xf32, #tpu.memory_space<vmem>>, vector<1x1x128xf32>
    %39 = vector.shape_cast %38 : vector<1x1x128xf32> to vector<1x128xf32>
    %40 = vector.broadcast %39 : vector<1x128xf32> to vector<4x128xf32>
    %41 = arith.addf %37, %40 : vector<4x128xf32>
    %cst_24 = arith.constant 0.000000e+00 : f32
    %42 = vector.broadcast %cst_24 : f32 to vector<4x128xf32>
    %43 = arith.maximumf %41, %42 : vector<4x128xf32>
    %c0_25 = arith.constant 0 : index
    %c0_26 = arith.constant 0 : index
    %c0_27 = arith.constant 0 : index
    %44 = vector.load %arg5[%c0_25, %c0_26, %c0_27] : memref<2x128x32xf32, #tpu.memory_space<vmem>>, vector<1x128x32xf32>
    %45 = vector.shape_cast %44 : vector<1x128x32xf32> to vector<128x32xf32>
    %cst_28 = arith.constant dense<0.000000e+00> : vector<4x32xf32>
    %46 = tpu.matmul %43, %45, %cst_28 {dimension_numbers = #tpu.dot_dimension_numbers<[1], [0], [0], [1], [0, 0, 1, 1], [], []>} : vector<4x128xf32>, vector<128x32xf32>, vector<4x32xf32> -> vector<4x32xf32>
    %c0_29 = arith.constant 0 : index
    %c4 = arith.constant 4 : index
    %c0_30 = arith.constant 0 : index
    %47 = vector.load %arg6[%c0_29, %c4, %c0_30] : memref<2x7x128xf32, #tpu.memory_space<vmem>>, vector<1x1x32xf32>
    %48 = vector.shape_cast %47 : vector<1x1x32xf32> to vector<1x32xf32>
    %49 = vector.broadcast %48 : vector<1x32xf32> to vector<4x32xf32>
    %50 = arith.addf %46, %49 : vector<4x32xf32>
    %51 = arith.addf %34, %50 : vector<4x32xf32>
    %c0_31 = arith.constant 0 : index
    %c5 = arith.constant 5 : index
    %c0_32 = arith.constant 0 : index
    %52 = vector.load %arg6[%c0_31, %c5, %c0_32] : memref<2x7x128xf32, #tpu.memory_space<vmem>>, vector<1x1x32xf32>
    %53 = vector.shape_cast %52 : vector<1x1x32xf32> to vector<1x32xf32>
    %c0_33 = arith.constant 0 : index
    %c6 = arith.constant 6 : index
    %c0_34 = arith.constant 0 : index
    %54 = vector.load %arg6[%c0_33, %c6, %c0_34] : memref<2x7x128xf32, #tpu.memory_space<vmem>>, vector<1x1x32xf32>
    %55 = vector.shape_cast %54 : vector<1x1x32xf32> to vector<1x32xf32>
    %cst_35 = arith.constant dense<0.000000e+00> : vector<4xf32>
    %56 = vector.multi_reduction <add>, %51, %cst_35 [1] : vector<4x32xf32> to vector<4xf32>
    %57 = vector.shape_cast %56 : vector<4xf32> to vector<4x1xf32>
    %cst_36 = arith.constant 3.200000e+01 : f32
    %58 = vector.broadcast %cst_36 : f32 to vector<4x1xf32>
    %59 = arith.divf %57, %58 : vector<4x1xf32>
    %60 = arith.mulf %51, %51 : vector<4x32xf32>
    %cst_37 = arith.constant dense<0.000000e+00> : vector<4xf32>
    %61 = vector.multi_reduction <add>, %60, %cst_37 [1] : vector<4x32xf32> to vector<4xf32>
    %62 = vector.shape_cast %61 : vector<4xf32> to vector<4x1xf32>
    %cst_38 = arith.constant 3.200000e+01 : f32
    %63 = vector.broadcast %cst_38 : f32 to vector<4x1xf32>
    %64 = arith.divf %62, %63 : vector<4x1xf32>
    %65 = arith.mulf %59, %59 : vector<4x1xf32>
    %66 = arith.subf %64, %65 : vector<4x1xf32>
    %cst_39 = arith.constant 9.99999974E-6 : f32
    %67 = vector.broadcast %cst_39 : f32 to vector<4x1xf32>
    %68 = arith.addf %66, %67 : vector<4x1xf32>
    %69 = math.rsqrt %68 : vector<4x1xf32>
    %70 = vector.broadcast %59 : vector<4x1xf32> to vector<4x32xf32>
    %71 = arith.subf %51, %70 : vector<4x32xf32>
    %72 = vector.broadcast %69 : vector<4x1xf32> to vector<4x32xf32>
    %73 = arith.mulf %71, %72 : vector<4x32xf32>
    %74 = vector.broadcast %53 : vector<1x32xf32> to vector<4x32xf32>
    %75 = arith.mulf %73, %74 : vector<4x32xf32>
    %76 = vector.broadcast %55 : vector<1x32xf32> to vector<4x32xf32>
    %77 = arith.addf %75, %76 : vector<4x32xf32>
    %c0_40 = arith.constant 0 : index
    %c0_41 = arith.constant 0 : index
    %c0_42 = arith.constant 0 : index
    %78 = vector.load %arg3[%c0_40, %c0_41, %c0_42] : memref<1x32x32xf32, #tpu.memory_space<vmem>>, vector<1x32x32xf32>
    %79 = vector.shape_cast %78 : vector<1x32x32xf32> to vector<32x32xf32>
    %cst_43 = arith.constant dense<0.000000e+00> : vector<4x32xf32>
    %80 = tpu.matmul %77, %79, %cst_43 {dimension_numbers = #tpu.dot_dimension_numbers<[1], [0], [0], [1], [0, 0, 1, 1], [], []>} : vector<4x32xf32>, vector<32x32xf32>, vector<4x32xf32> -> vector<4x32xf32>
    %c1_44 = arith.constant 1 : index
    %c0_45 = arith.constant 0 : index
    %c0_46 = arith.constant 0 : index
    %81 = vector.load %arg6[%c1_44, %c0_45, %c0_46] : memref<2x7x128xf32, #tpu.memory_space<vmem>>, vector<1x1x32xf32>
    %82 = vector.shape_cast %81 : vector<1x1x32xf32> to vector<1x32xf32>
    %83 = vector.broadcast %82 : vector<1x32xf32> to vector<4x32xf32>
    %84 = arith.addf %80, %83 : vector<4x32xf32>
    %c1_47 = arith.constant 1 : index
    %c1_48 = arith.constant 1 : index
    %c0_49 = arith.constant 0 : index
    %85 = vector.load %arg6[%c1_47, %c1_48, %c0_49] : memref<2x7x128xf32, #tpu.memory_space<vmem>>, vector<1x1x32xf32>
    %86 = vector.shape_cast %85 : vector<1x1x32xf32> to vector<1x32xf32>
    %c1_50 = arith.constant 1 : index
    %c2_51 = arith.constant 2 : index
    %c0_52 = arith.constant 0 : index
    %87 = vector.load %arg6[%c1_50, %c2_51, %c0_52] : memref<2x7x128xf32, #tpu.memory_space<vmem>>, vector<1x1x32xf32>
    %88 = vector.shape_cast %87 : vector<1x1x32xf32> to vector<1x32xf32>
    %cst_53 = arith.constant dense<0.000000e+00> : vector<4xf32>
    %89 = vector.multi_reduction <add>, %84, %cst_53 [1] : vector<4x32xf32> to vector<4xf32>
    %90 = vector.shape_cast %89 : vector<4xf32> to vector<4x1xf32>
    %cst_54 = arith.constant 3.200000e+01 : f32
    %91 = vector.broadcast %cst_54 : f32 to vector<4x1xf32>
    %92 = arith.divf %90, %91 : vector<4x1xf32>
    %93 = arith.mulf %84, %84 : vector<4x32xf32>
    %cst_55 = arith.constant dense<0.000000e+00> : vector<4xf32>
    %94 = vector.multi_reduction <add>, %93, %cst_55 [1] : vector<4x32xf32> to vector<4xf32>
    %95 = vector.shape_cast %94 : vector<4xf32> to vector<4x1xf32>
    %cst_56 = arith.constant 3.200000e+01 : f32
    %96 = vector.broadcast %cst_56 : f32 to vector<4x1xf32>
    %97 = arith.divf %95, %96 : vector<4x1xf32>
    %98 = arith.mulf %92, %92 : vector<4x1xf32>
    %99 = arith.subf %97, %98 : vector<4x1xf32>
    %cst_57 = arith.constant 9.99999974E-6 : f32
    %100 = vector.broadcast %cst_57 : f32 to vector<4x1xf32>
    %101 = arith.addf %99, %100 : vector<4x1xf32>
    %102 = math.rsqrt %101 : vector<4x1xf32>
    %103 = vector.broadcast %92 : vector<4x1xf32> to vector<4x32xf32>
    %104 = arith.subf %84, %103 : vector<4x32xf32>
    %105 = vector.broadcast %102 : vector<4x1xf32> to vector<4x32xf32>
    %106 = arith.mulf %104, %105 : vector<4x32xf32>
    %107 = vector.broadcast %86 : vector<1x32xf32> to vector<4x32xf32>
    %108 = arith.mulf %106, %107 : vector<4x32xf32>
    %109 = vector.broadcast %88 : vector<1x32xf32> to vector<4x32xf32>
    %110 = arith.addf %108, %109 : vector<4x32xf32>
    %c1_58 = arith.constant 1 : index
    %c0_59 = arith.constant 0 : index
    %c0_60 = arith.constant 0 : index
    %111 = vector.load %arg4[%c1_58, %c0_59, %c0_60] : memref<2x32x128xf32, #tpu.memory_space<vmem>>, vector<1x32x128xf32>
    %112 = vector.shape_cast %111 : vector<1x32x128xf32> to vector<32x128xf32>
    %cst_61 = arith.constant dense<0.000000e+00> : vector<4x128xf32>
    %113 = tpu.matmul %110, %112, %cst_61 {dimension_numbers = #tpu.dot_dimension_numbers<[1], [0], [0], [1], [0, 0, 1, 1], [], []>} : vector<4x32xf32>, vector<32x128xf32>, vector<4x128xf32> -> vector<4x128xf32>
    %c1_62 = arith.constant 1 : index
    %c3_63 = arith.constant 3 : index
    %c0_64 = arith.constant 0 : index
    %114 = vector.load %arg6[%c1_62, %c3_63, %c0_64] : memref<2x7x128xf32, #tpu.memory_space<vmem>>, vector<1x1x128xf32>
    %115 = vector.shape_cast %114 : vector<1x1x128xf32> to vector<1x128xf32>
    %116 = vector.broadcast %115 : vector<1x128xf32> to vector<4x128xf32>
    %117 = arith.addf %113, %116 : vector<4x128xf32>
    %cst_65 = arith.constant 0.000000e+00 : f32
    %118 = vector.broadcast %cst_65 : f32 to vector<4x128xf32>
    %119 = arith.maximumf %117, %118 : vector<4x128xf32>
    %c1_66 = arith.constant 1 : index
    %c0_67 = arith.constant 0 : index
    %c0_68 = arith.constant 0 : index
    %120 = vector.load %arg5[%c1_66, %c0_67, %c0_68] : memref<2x128x32xf32, #tpu.memory_space<vmem>>, vector<1x128x32xf32>
    %121 = vector.shape_cast %120 : vector<1x128x32xf32> to vector<128x32xf32>
    %cst_69 = arith.constant dense<0.000000e+00> : vector<4x32xf32>
    %122 = tpu.matmul %119, %121, %cst_69 {dimension_numbers = #tpu.dot_dimension_numbers<[1], [0], [0], [1], [0, 0, 1, 1], [], []>} : vector<4x128xf32>, vector<128x32xf32>, vector<4x32xf32> -> vector<4x32xf32>
    %c1_70 = arith.constant 1 : index
    %c4_71 = arith.constant 4 : index
    %c0_72 = arith.constant 0 : index
    %123 = vector.load %arg6[%c1_70, %c4_71, %c0_72] : memref<2x7x128xf32, #tpu.memory_space<vmem>>, vector<1x1x32xf32>
    %124 = vector.shape_cast %123 : vector<1x1x32xf32> to vector<1x32xf32>
    %125 = vector.broadcast %124 : vector<1x32xf32> to vector<4x32xf32>
    %126 = arith.addf %122, %125 : vector<4x32xf32>
    %127 = arith.addf %110, %126 : vector<4x32xf32>
    %c1_73 = arith.constant 1 : index
    %c5_74 = arith.constant 5 : index
    %c0_75 = arith.constant 0 : index
    %128 = vector.load %arg6[%c1_73, %c5_74, %c0_75] : memref<2x7x128xf32, #tpu.memory_space<vmem>>, vector<1x1x32xf32>
    %129 = vector.shape_cast %128 : vector<1x1x32xf32> to vector<1x32xf32>
    %c1_76 = arith.constant 1 : index
    %c6_77 = arith.constant 6 : index
    %c0_78 = arith.constant 0 : index
    %130 = vector.load %arg6[%c1_76, %c6_77, %c0_78] : memref<2x7x128xf32, #tpu.memory_space<vmem>>, vector<1x1x32xf32>
    %131 = vector.shape_cast %130 : vector<1x1x32xf32> to vector<1x32xf32>
    %cst_79 = arith.constant dense<0.000000e+00> : vector<4xf32>
    %132 = vector.multi_reduction <add>, %127, %cst_79 [1] : vector<4x32xf32> to vector<4xf32>
    %133 = vector.shape_cast %132 : vector<4xf32> to vector<4x1xf32>
    %cst_80 = arith.constant 3.200000e+01 : f32
    %134 = vector.broadcast %cst_80 : f32 to vector<4x1xf32>
    %135 = arith.divf %133, %134 : vector<4x1xf32>
    %136 = arith.mulf %127, %127 : vector<4x32xf32>
    %cst_81 = arith.constant dense<0.000000e+00> : vector<4xf32>
    %137 = vector.multi_reduction <add>, %136, %cst_81 [1] : vector<4x32xf32> to vector<4xf32>
    %138 = vector.shape_cast %137 : vector<4xf32> to vector<4x1xf32>
    %cst_82 = arith.constant 3.200000e+01 : f32
    %139 = vector.broadcast %cst_82 : f32 to vector<4x1xf32>
    %140 = arith.divf %138, %139 : vector<4x1xf32>
    %141 = arith.mulf %135, %135 : vector<4x1xf32>
    %142 = arith.subf %140, %141 : vector<4x1xf32>
    %cst_83 = arith.constant 9.99999974E-6 : f32
    %143 = vector.broadcast %cst_83 : f32 to vector<4x1xf32>
    %144 = arith.addf %142, %143 : vector<4x1xf32>
    %145 = math.rsqrt %144 : vector<4x1xf32>
    %146 = vector.broadcast %135 : vector<4x1xf32> to vector<4x32xf32>
    %147 = arith.subf %127, %146 : vector<4x32xf32>
    %148 = vector.broadcast %145 : vector<4x1xf32> to vector<4x32xf32>
    %149 = arith.mulf %147, %148 : vector<4x32xf32>
    %150 = vector.broadcast %129 : vector<1x32xf32> to vector<4x32xf32>
    %151 = arith.mulf %149, %150 : vector<4x32xf32>
    %152 = vector.broadcast %131 : vector<1x32xf32> to vector<4x32xf32>
    %153 = arith.addf %151, %152 : vector<4x32xf32>
    %cst_84 = arith.constant dense<0.000000e+00> : vector<4x128xf32>
    %154 = tpu.matmul %153, %0, %cst_84 {dimension_numbers = #tpu.dot_dimension_numbers<[1], [0], [0], [1], [0, 0, 1, 1], [], []>} : vector<4x32xf32>, vector<32x128xf32>, vector<4x128xf32> -> vector<4x128xf32>
    %155 = vector.broadcast %1 : vector<1x128xf32> to vector<4x128xf32>
    %156 = arith.addf %154, %155 : vector<4x128xf32>
    %c0_85 = arith.constant 0 : index
    %c0_86 = arith.constant 0 : index
    %157 = vector.load %arg8[%c0_85, %c0_86] : memref<4x128xf32, #tpu.memory_space<vmem>>, vector<4x128xf32>
    tpu.vector_store %arg8[%c0_85, %c0_86], %156 {strides = array<i32>} : memref<4x128xf32, #tpu.memory_space<vmem>>, vector<4x128xf32>,
    return
  }
  func.func @transform_0(%arg0: i32) -> (i32, i32) {
    %c0_i32 = arith.constant 0 : i32
    %c0_i32_0 = arith.constant 0 : i32
    return %arg0, %c0_i32 : i32, i32
  }
  func.func @transform_1(%arg0: i32) -> (i32, i32) {
    %c0_i32 = arith.constant 0 : i32
    %c0_i32_0 = arith.constant 0 : i32
    %c0_i32_1 = arith.constant 0 : i32
    return %c0_i32, %c0_i32_0 : i32, i32
  }
  func.func @transform_2(%arg0: i32) -> (i32, i32, i32) {
    %c0_i32 = arith.constant 0 : i32
    %c0_i32_0 = arith.constant 0 : i32
    %c0_i32_1 = arith.constant 0 : i32
    %c0_i32_2 = arith.constant 0 : i32
    return %c0_i32, %c0_i32_0, %c0_i32_1 : i32, i32, i32
  }
  func.func @transform_3(%arg0: i32) -> (i32, i32, i32) {
    %c0_i32 = arith.constant 0 : i32
    %c0_i32_0 = arith.constant 0 : i32
    %c0_i32_1 = arith.constant 0 : i32
    %c0_i32_2 = arith.constant 0 : i32
    return %c0_i32, %c0_i32_0, %c0_i32_1 : i32, i32, i32
  }
  func.func @transform_4(%arg0: i32) -> (i32, i32, i32) {
    %c0_i32 = arith.constant 0 : i32
    %c0_i32_0 = arith.constant 0 : i32
    %c0_i32_1 = arith.constant 0 : i32
    %c0_i32_2 = arith.constant 0 : i32
    return %c0_i32, %c0_i32_0, %c0_i32_1 : i32, i32, i32
  }
  func.func @transform_5(%arg0: i32) -> (i32, i32, i32) {
    %c0_i32 = arith.constant 0 : i32
    %c0_i32_0 = arith.constant 0 : i32
    %c0_i32_1 = arith.constant 0 : i32
    %c0_i32_2 = arith.constant 0 : i32
    return %c0_i32, %c0_i32_0, %c0_i32_1 : i32, i32, i32
  }
  func.func @transform_6(%arg0: i32) -> (i32, i32) {
    %c0_i32 = arith.constant 0 : i32
    %c0_i32_0 = arith.constant 0 : i32
    %c0_i32_1 = arith.constant 0 : i32
    return %c0_i32, %c0_i32_0 : i32, i32
  }
  func.func @transform_7(%arg0: i32) -> (i32, i32) {
    %c0_i32 = arith.constant 0 : i32
    %c0_i32_0 = arith.constant 0 : i32
    return %arg0, %c0_i32 : i32, i32
  }
}

</mosaic_0001>

<bundles_post_ra>
// kernel: transformer_audio_encoder.1
= control target key start
LH: loop header
LB: loop body
LE: loop exit
PB: predicated region body
PF: predicated region fallthrough
CT: control target
= control target key end

     0   :  { %v1052_v0 = vmov 0.0|0.0   ;;  %vm1053_vm0 = vmmov 0   ;;  %v1054_v3 = vmov 0.0   ;;  %vm39_vm1 = vcmask 130048   ;;  %s1347_s1 = inlined_call_operand.vmem [shape: f32[16,32], index: 1, kind: input, shape index: {}]   ;;  %s1348_s0 = inlined_call_operand.vmem [shape: f32[4,16], index: 0, kind: input, shape index: {}]   ;;  %s1349_s5 = inlined_call_operand.vmem [shape: f32[2,7,128], index: 5, kind: input, shape index: {}]   ;;  %s1350_s3 = inlined_call_operand.vmem [shape: f32[2,32,128], index: 3, kind: input, shape index: {}]   ;;  %s1351_s4 = inlined_call_operand.vmem [shape: f32[2,128,32], index: 4, kind: input, shape index: {}]   ;;  %s1352_s2 = inlined_call_operand.vmem [shape: f32[1,32,32], index: 2, kind: input, shape index: {}]   ;;  %s1353_s6 = inlined_call_operand.vmem [shape: f32[33,128], index: 6, kind: input, shape index: {}]   ;;  %s1354_s7 = inlined_call_operand.vmem [shape: f32[4,128], index: 7, kind: output, shape index: {}]  }
   0x1   :  { %966 = vmatprep.subr.bf16.mxu0 %v1052_v0  ;;  %v32_v1 = vld [vmem:[%s1347_s1] sm:$0xff]  ;;  %v33_v2 = vld [vmem:[%s1347_s1 + $0x8] sm:$0xff]  ;;  %849 = vmatprep.mubr.msk.f32.mxu0 %vm1053_vm0, %v1054_v3  ;;  %vm115_vm2 = vcmask 257024   ;;  %v144_v16 = vld [vmem:[%s1350_s3 + $0x10] sm:$0xff]  ;;  %vm151_vm3 = vcmask 261120  }
   0x2   :  { %v967_v4 = vpack.c.bf16 %v33_v2, %v32_v1  ;;  %999 = vmatprep.subr.bf16.mxu1 %v1052_v0  ;;  %906 = vmatprep.mubr.msk.f32.mxu1 %vm1053_vm0, %v1054_v3  ;;  %v31_v5 = vld [vmem:[%s1348_s0] sm:$0xf]  ;;  %v143_v14 = vld [vmem:[%s1350_s3 + $0x8] sm:$0xff]  ;;  %v145_v17 = vld [vmem:[%s1350_s3 + $0x18] sm:$0xff] }
   0x3   :  { %v741_v6 = vld [vmem:[%s1349_s5] ss:$0 sm:$0xff]  ;;  %v973_v18 = vpack.c.bf16 %v145_v17, %v144_v16  ;;  %v743_v28 = vld [vmem:[%s1349_s5 + $0x1] ss:$0 sm:$0xff]  ;;  %v227_v31 = vld [vmem:[%s1351_s4 + $0x8] sm:$0xff] }
   0x4   :  { %968 = vmatpush3.bf16.msra.mxu0 %v967_v4  ;;  %v142_v13 = vld [vmem:[%s1350_s3] sm:$0xff]  ;;  %v228_v36 = vld [vmem:[%s1351_s4 + $0x10] sm:$0xff]  ;;  %v229_v37 = vld [vmem:[%s1351_s4 + $0x18] sm:$0xff] }
   0x5   :  { %969 = vmatprep.subr.bf16.mxu0 %v1052_v0  ;;  %v970_v15 = vpack.c.bf16 %v143_v14, %v142_v13  ;;  %v226_v30 = vld [vmem:[%s1351_s4] sm:$0xff]  ;;  %v979_v38 = vpack.c.bf16 %v229_v37, %v228_v36  ;;  %v231_v40 = vld [vmem:[%s1351_s4 + $0x28] sm:$0xff]  ;;  %v232_v42 = vld [vmem:[%s1351_s4 + $0x30] sm:$0xff] }
   0x6   :  { %v744_v32 = vld [vmem:[%s1349_s5 + $0x2] ss:$0 sm:$0xff]  ;;  %v976_v34 = vpack.c.bf16 %v227_v31, %v226_v30  ;;  %v233_v43 = vld [vmem:[%s1351_s4 + $0x38] sm:$0xff]  ;;  %v235_v46 = vld [vmem:[%s1351_s4 + $0x48] sm:$0xff] }
   0x7   :  { %850 = vmatmul.mubr.msk.f32.vlgmr.msra.gmra.mrb[0].mxu0 %vm39_vm1, %v31_v5  ;;  %v230_v39 = vld [vmem:[%s1351_s4 + $0x20] sm:$0xff]  ;;  %v985_v44 = vpack.c.bf16 %v233_v43, %v232_v42  ;;  %v236_v48 = vld [vmem:[%s1351_s4 + $0x50] sm:$0xff]  ;;  %v237_v49 = vld [vmem:[%s1351_s4 + $0x58] sm:$0xff] }
   0x8   :  { %860 = vmatprep.mubr.msk.f32.mxu0 %vm1053_vm0, %v1054_v3  ;;  %971 = vmatpush3.bf16.msra.mxu0 %v970_v15  ;;  %v982_v41 = vpack.c.bf16 %v231_v40, %v230_v39  ;;  %v234_v45 = vld [vmem:[%s1351_s4 + $0x40] sm:$0xff]  ;;  %v991_v50 = vpack.c.bf16 %v237_v49, %v236_v48  ;;  %v239_v52 = vld [vmem:[%s1351_s4 + $0x68] sm:$0xff]  ;;  %v240_v54 = vld [vmem:[%s1351_s4 + $0x70] sm:$0xff] }
   0x9   :  { %972 = vmatprep.subr.bf16.mxu0 %v1052_v0  ;;  %v988_v47 = vpack.c.bf16 %v235_v46, %v234_v45  ;;  %v238_v51 = vld [vmem:[%s1351_s4 + $0x60] sm:$0xff]  ;;  %v241_v55 = vld [vmem:[%s1351_s4 + $0x78] sm:$0xff]  ;;  %v758_v36 = vld [vmem:[%s1350_s3 + $0x28] sm:$0xff] }
   0xa   :  { %v994_v53 = vpack.c.bf16 %v239_v52, %v238_v51  ;;  %v997_v56 = vpack.c.bf16 %v241_v55, %v240_v54  ;;  %v745_v57 = vld [vmem:[%s1349_s5 + $0x3] ss:$0 sm:$0xff]  ;;  %v747_v62 = vld [vmem:[%s1349_s5 + $0x4] ss:$0 sm:$0xff]  ;;  %v760_v39 = vld [vmem:[%s1350_s3 + $0x38] sm:$0xff] }
   0xb   :  { %v764_v52 = vld [vmem:[%s1351_s4 + $0x80] sm:$0xff]  ;;  %v756_v54 = vld [vmem:[%s1349_s5 + $0xa] ss:$0 sm:$0xff] }
   0xc   :  { %974 = vmatpush3.bf16.msra.mxu0 %v973_v18 }
   0xd   :  { %975 = vmatprep.subr.bf16.mxu0 %v1052_v0 }
  0xda   :  { %v109_v7 = vpop.f32.mrb[0].mxu0 }
  0xdb   :  { %v110_v8 = vadd.f32 %v741_v6, %v109_v7  ;;  %v851_v9 = vpop.f32.mrb[1].mxu0 }
  0xdc   :  { %v346_v9 = vld [vmem:[%s1352_s2 + $0x8] sm:$0xff] }
  0xdd   :  { %v116_v10 = vsel %vm115_vm2, %v110_v8, 0.0  ;;  %v121_v11 = vmul.f32 %v110_v8, %v110_v8 }
  0xde   :  { %117 = vadd.xlane.f32.xlu0 %v116_v10  ;;  %v347_v10 = vld [vmem:[%s1352_s2 + $0x10] sm:$0xff] }
  0xdf   :  { %v122_v12 = vsel %vm115_vm2, %v121_v11, 0.0 }
  0xe2   :  { %123 = vadd.xlane.f32.xlu0 %v122_v12  ;;  %v348_v12 = vld [vmem:[%s1352_s2 + $0x18] sm:$0xff] }
  0xe3   :  { %v1003_v13 = vpack.c.bf16 %v348_v12, %v347_v10  ;;  %v776_v10 = vld [vmem:[%s1351_s4 + $0xe0] sm:$0xff] }
 0x16b   :  { %v118_v19 = vpop.xlane.xlu0 %117 }
 0x16c   :  { %v120_v20 = vmul.f32 0.03125, %v118_v19 }
 0x16e   :  { %v126_v22 = vmul.f32 %v120_v20, %v120_v20  ;;  %v130_v26 = vsub.f32 %v110_v8, %v120_v20  ;;  %v345_v8 = vld [vmem:[%s1352_s2] sm:$0xff] }
 0x16f   :  { %v124_v21 = vpop.xlane.xlu0 %123  ;;  %v1000_v11 = vpack.c.bf16 %v346_v9, %v345_v8  ;;  %v775_v8 = vld [vmem:[%s1351_s4 + $0xd8] sm:$0xff] }
 0x170   :  { %v125_v23 = vmul.f32 0.03125, %v124_v21 }
 0x171   :  { %1001 = vmatpush3.bf16.msra.mxu1 %v1000_v11  ;;  %v777_v11 = vld [vmem:[%s1351_s4 + $0xe8] sm:$0xff] }
 0x172   :  { %v127_v24 = vsub.f32 %v125_v23, %v126_v22  ;;  %1002 = vmatprep.subr.bf16.mxu1 %v1052_v0  ;;  %v748_v23 = vld [vmem:[%s1349_s5 + $0x5] ss:$0 sm:$0xff]  ;;  %v1030_v12 = vpack.c.bf16 %v777_v11, %v776_v10 }
 0x174   :  { %v128_v25 = vadd.f32 1e-05, %v127_v24 }
 0x175   :  { %1004 = vmatpush3.bf16.msra.mxu1 %v1003_v13  ;;  %v778_v13 = vld [vmem:[%s1351_s4 + $0xf0] sm:$0xff] }
 0x176   :  { %1044 = vrsqrt.f32 %v128_v25  ;;  %1005 = vmatprep.subr.bf16.mxu1 %v1052_v0  ;;  %v749_v25 = vld [vmem:[%s1349_s5 + $0x6] ss:$0 sm:$0xff] }
 0x180   :  { %v1045_v27 = vpop.eup %1044 }
 0x181   :  { %v131_v29 = vmul.f32 %v1045_v27, %v130_v26 }
 0x183   :  { %v136_v33 = vmul.f32 %v743_v28, %v131_v29  ;;  %v751_v28 = vld [vmem:[%s1349_s5 + $0x8] ss:$0 sm:$0xff] }
 0x185   :  { %v141_v35 = vadd.f32 %v744_v32, %v136_v33 }
 0x187   :  { %861 = vmatmul.mubr.msk.f32.vlgmr.msra.gmra.mrb[2].mxu0 %vm151_vm3, %v141_v35 }
 0x188   :  { %977 = vmatpush3.bf16.msra.mxu0 %v976_v34  ;;  %895 = vmatprep.mubr.msk.f32.mxu0 %vm1053_vm0, %v1054_v3 }
 0x189   :  { %978 = vmatprep.subr.bf16.mxu0 %v1052_v0 }
 0x18c   :  { %980 = vmatpush3.bf16.msra.mxu0 %v979_v38  ;;  %v759_v38 = vld [vmem:[%s1350_s3 + $0x30] sm:$0xff] }
 0x18d   :  { %981 = vmatprep.subr.bf16.mxu0 %v1052_v0  ;;  %v1009_v40 = vpack.c.bf16 %v760_v39, %v759_v38 }
 0x190   :  { %983 = vmatpush3.bf16.msra.mxu0 %v982_v41 }
 0x191   :  { %984 = vmatprep.subr.bf16.mxu0 %v1052_v0 }
 0x194   :  { %986 = vmatpush3.bf16.msra.mxu0 %v985_v44 }
 0x195   :  { %987 = vmatprep.subr.bf16.mxu0 %v1052_v0 }
 0x198   :  { %989 = vmatpush3.bf16.msra.mxu0 %v988_v47 }
 0x199   :  { %990 = vmatprep.subr.bf16.mxu0 %v1052_v0 }
 0x19c   :  { %992 = vmatpush3.bf16.msra.mxu0 %v991_v50  ;;  %v755_v50 = vld [vmem:[%s1349_s5 + $0x9] ss:$0 sm:$0xff] }
 0x19d   :  { %993 = vmatprep.subr.bf16.mxu0 %v1052_v0 }
 0x1a0   :  { %995 = vmatpush3.bf16.msra.mxu0 %v994_v53  ;;  %v765_v53 = vld [vmem:[%s1351_s4 + $0x88] sm:$0xff] }
 0x1a1   :  { %996 = vmatprep.subr.bf16.mxu0 %v1052_v0 }
 0x1a4   :  { %998 = vmatpush3.bf16.msra.mxu0 %v997_v56  ;;  %v1012_v56 = vpack.c.bf16 %v765_v53, %v764_v52 }
 0x1a5   :  { %1035 = vmatprep.subr.bf16.mxu0 %v1052_v0 }
 0x25a   :  { %v221_v58 = vpop.f32.mrb[2].mxu0 }
 0x25b   :  { %v222_v59 = vadd.f32 %v745_v57, %v221_v58  ;;  %v862_v60 = vpop.f32.mrb[3].mxu0  ;;  %v766_v58 = vld [vmem:[%s1351_s4 + $0x90] sm:$0xff] }
 0x25d   :  { %v225_v61 = vmax.f32 %v222_v59, 0.0  ;;  %v767_v59 = vld [vmem:[%s1351_s4 + $0x98] sm:$0xff] }
 0x25e   :  { %v1015_v60 = vpack.c.bf16 %v767_v59, %v766_v58 }
 0x25f   :  { %896 = vmatmul.mubr.f32.vlgmr.msra.gmra.mrb[4].mxu0 %v225_v61  ;;  %v768_v61 = vld [vmem:[%s1351_s4 + $0xa0] sm:$0xff] }
 0x260   :  { %963 = vmatprep.mubr.msk.f32.mxu0 %vm1053_vm0, %v1054_v3 }
 0x332   :  { %v313_v63 = vpop.f32.mrb[4].mxu0 }
 0x333   :  { %v314_v1 = vadd.f32 %v747_v62, %v313_v63  ;;  %v897_v2 = vpop.f32.mrb[5].mxu0  ;;  %v769_v62 = vld [vmem:[%s1351_s4 + $0xa8] sm:$0xff] }
 0x334   :  { %v1018_v63 = vpack.c.bf16 %v769_v62, %v768_v61 }
 0x335   :  { %v317_v4 = vadd.f32 %v314_v1, %v141_v35  ;;  %v757_v35 = vld [vmem:[%s1350_s3 + $0x20] sm:$0xff]  ;;  %v770_v1 = vld [vmem:[%s1351_s4 + $0xb0] sm:$0xff] }
 0x336   :  { %v1006_v37 = vpack.c.bf16 %v758_v36, %v757_v35 }
 0x337   :  { %v320_v5 = vsel %vm115_vm2, %v317_v4, 0.0  ;;  %v324_v6 = vmul.f32 %v317_v4, %v317_v4 }
 0x338   :  { %321 = vadd.xlane.f32.xlu1 %v320_v5  ;;  %v773_v5 = vld [vmem:[%s1351_s4 + $0xc8] sm:$0xff] }
 0x339   :  { %v325_v7 = vsel %vm115_vm2, %v324_v6, 0.0 }
 0x33c   :  { %326 = vadd.xlane.f32.xlu1 %v325_v7  ;;  %v774_v7 = vld [vmem:[%s1351_s4 + $0xd0] sm:$0xff] }
 0x33d   :  { %v1027_v9 = vpack.c.bf16 %v775_v8, %v774_v7 }
 0x3c5   :  { %v322_v14 = vpop.xlane.xlu1 %321 }
 0x3c6   :  { %v323_v15 = vmul.f32 0.03125, %v322_v14  ;;  %v779_v14 = vld [vmem:[%s1351_s4 + $0xf8] sm:$0xff] }
 0x3c8   :  { %v329_v17 = vmul.f32 %v323_v15, %v323_v15  ;;  %v333_v21 = vsub.f32 %v317_v4, %v323_v15  ;;  %v772_v4 = vld [vmem:[%s1351_s4 + $0xc0] sm:$0xff]  ;;  %v1033_v15 = vpack.c.bf16 %v779_v14, %v778_v13 }
 0x3c9   :  { %v327_v16 = vpop.xlane.xlu1 %326  ;;  %v1024_v6 = vpack.c.bf16 %v773_v5, %v772_v4 }
 0x3ca   :  { %v328_v18 = vmul.f32 0.03125, %v327_v16  ;;  %v762_v16 = vld [vmem:[%s1349_s5 + $0xb] ss:$0 sm:$0xff] }
 0x3cc   :  { %v330_v19 = vsub.f32 %v328_v18, %v329_v17 }
 0x3ce   :  { %v331_v20 = vadd.f32 1e-05, %v330_v19 }
 0x3d0   :  { %1046 = vrsqrt.f32 %v331_v20 }
 0x3da   :  { %v1047_v22 = vpop.eup %1046 }
 0x3db   :  { %v334_v24 = vmul.f32 %v1047_v22, %v333_v21  ;;  %v781_v21 = vld [vmem:[%s1349_s5 + $0xc] ss:$0 sm:$0xff] }
 0x3dd   :  { %v339_v26 = vmul.f32 %v748_v23, %v334_v24 }
 0x3df   :  { %v344_v27 = vadd.f32 %v749_v25, %v339_v26 }
 0x3e1   :  { %907 = vmatmul.mubr.msk.f32.vlgmr.msra.gmra.mrb[0].mxu1 %vm151_vm3, %v344_v27 }
 0x3e2   :  { %917 = vmatprep.mubr.msk.f32.mxu1 %vm1053_vm0, %v1054_v3  ;;  %1007 = vmatpush3.bf16.msra.mxu1 %v1006_v37 }
 0x3e3   :  { %1008 = vmatprep.subr.bf16.mxu1 %v1052_v0 }
 0x3e6   :  { %1010 = vmatpush3.bf16.msra.mxu1 %v1009_v40 }
 0x3e7   :  { %1011 = vmatprep.subr.bf16.mxu1 %v1052_v0 }
 0x4b4   :  { %v424_v29 = vpop.f32.mrb[0].mxu1 }
 0x4b5   :  { %v425_v30 = vadd.f32 %v751_v28, %v424_v29  ;;  %v908_v31 = vpop.f32.mrb[1].mxu1  ;;  %v26_v29 = vld [vmem:[%s1353_s6] sm:$0xff] }
 0x4b7   :  { %v430_v32 = vsel %vm115_vm2, %v425_v30, 0.0  ;;  %v434_v33 = vmul.f32 %v425_v30, %v425_v30 }
 0x4b8   :  { %431 = vadd.xlane.f32.xlu0 %v430_v32  ;;  %v28_v32 = vld [vmem:[%s1353_s6 + $0x10] sm:$0xff] }
 0x4b9   :  { %v435_v34 = vsel %vm115_vm2, %v434_v33, 0.0  ;;  %v29_v33 = vld [vmem:[%s1353_s6 + $0x18] sm:$0xff] }
 0x4ba   :  { %436 = vadd.xlane.f32.xlu1 %v435_v34  ;;  %v1039_v34 = vpack.c.bf16 %v29_v33, %v28_v32 }
 0x545   :  { %v432_v41 = vpop.xlane.xlu0 %431 }
 0x546   :  { %v433_v42 = vmul.f32 0.03125, %v432_v41 }
 0x547   :  { %v437_v43 = vpop.xlane.xlu1 %436 }
 0x548   :  { %v439_v44 = vmul.f32 %v433_v42, %v433_v42  ;;  %v438_v45 = vmul.f32 0.03125, %v437_v43  ;;  %v443_v48 = vsub.f32 %v425_v30, %v433_v42  ;;  %v27_v30 = vld [vmem:[%s1353_s6 + $0x8] sm:$0xff] }
 0x549   :  { %v1036_v31 = vpack.c.bf16 %v27_v30, %v26_v29  ;;  %v784_v43 = vld [vmem:[%s1349_s5 + $0xd] ss:$0 sm:$0xff] }
 0x54a   :  { %v440_v46 = vsub.f32 %v438_v45, %v439_v44  ;;  %v785_v45 = vld [vmem:[%s1349_s5 + $0xe] ss:$0 sm:$0xff] }
 0x54b   :  { %1037 = vmatpush3.bf16.msra.mxu0 %v1036_v31 }
 0x54c   :  { %v441_v47 = vadd.f32 1e-05, %v440_v46  ;;  %1038 = vmatprep.subr.bf16.mxu0 %v1052_v0 }
 0x54e   :  { %1048 = vrsqrt.f32 %v441_v47 }
 0x54f   :  { %1040 = vmatpush3.bf16.msra.mxu0 %v1039_v34 }
 0x558   :  { %v1049_v49 = vpop.eup %1048 }
 0x559   :  { %v444_v51 = vmul.f32 %v1049_v49, %v443_v48  ;;  %v786_v48 = vld [vmem:[%s1353_s6 + $0x20] ss:$0 sm:$0xff] }
 0x55b   :  { %v449_v55 = vmul.f32 %v755_v50, %v444_v51 }
 0x55d   :  { %v454_v57 = vadd.f32 %v756_v54, %v449_v55 }
 0x55f   :  { %918 = vmatmul.mubr.msk.f32.vlgmr.msra.gmra.mrb[2].mxu1 %vm151_vm3, %v454_v57 }
 0x560   :  { %1013 = vmatpush3.bf16.msra.mxu1 %v1012_v56  ;;  %952 = vmatprep.mubr.msk.f32.mxu1 %vm1053_vm0, %v1054_v3  ;;  %v771_v3 = vld [vmem:[%s1351_s4 + $0xb8] sm:$0xff] }
 0x561   :  { %1014 = vmatprep.subr.bf16.mxu1 %v1052_v0  ;;  %v1021_v2 = vpack.c.bf16 %v771_v3, %v770_v1 }
 0x564   :  { %1016 = vmatpush3.bf16.msra.mxu1 %v1015_v60 }
 0x565   :  { %1017 = vmatprep.subr.bf16.mxu1 %v1052_v0 }
 0x568   :  { %1019 = vmatpush3.bf16.msra.mxu1 %v1018_v63 }
 0x569   :  { %1020 = vmatprep.subr.bf16.mxu1 %v1052_v0 }
 0x56c   :  { %1022 = vmatpush3.bf16.msra.mxu1 %v1021_v2 }
 0x56d   :  { %1023 = vmatprep.subr.bf16.mxu1 %v1052_v0 }
 0x570   :  { %1025 = vmatpush3.bf16.msra.mxu1 %v1024_v6 }
 0x571   :  { %1026 = vmatprep.subr.bf16.mxu1 %v1052_v0 }
 0x574   :  { %1028 = vmatpush3.bf16.msra.mxu1 %v1027_v9 }
 0x575   :  { %1029 = vmatprep.subr.bf16.mxu1 %v1052_v0 }
 0x578   :  { %1031 = vmatpush3.bf16.msra.mxu1 %v1030_v12 }
 0x579   :  { %1032 = vmatprep.subr.bf16.mxu1 %v1052_v0 }
 0x57c   :  { %1034 = vmatpush3.bf16.msra.mxu1 %v1033_v15 }
 0x632   :  { %v534_v17 = vpop.f32.mrb[2].mxu1 }
 0x633   :  { %v535_v18 = vadd.f32 %v762_v16, %v534_v17  ;;  %v919_v19 = vpop.f32.mrb[3].mxu1 }
 0x635   :  { %v538_v20 = vmax.f32 %v535_v18, 0.0 }
 0x637   :  { %953 = vmatmul.mubr.f32.vlgmr.msra.gmra.mrb[4].mxu1 %v538_v20 }
 0x70a   :  { %v627_v22 = vpop.f32.mrb[4].mxu1 }
 0x70b   :  { %v628_v23 = vadd.f32 %v781_v21, %v627_v22  ;;  %v954_v24 = vpop.f32.mrb[5].mxu1 }
 0x70d   :  { %v631_v25 = vadd.f32 %v628_v23, %v454_v57 }
 0x70f   :  { %v634_v26 = vsel %vm115_vm2, %v631_v25, 0.0  ;;  %v638_v27 = vmul.f32 %v631_v25, %v631_v25 }
 0x710   :  { %635 = vadd.xlane.f32.xlu0 %v634_v26 }
 0x711   :  { %v639_v28 = vsel %vm115_vm2, %v638_v27, 0.0 }
 0x712   :  { %640 = vadd.xlane.f32.xlu1 %v639_v28 }
 0x79d   :  { %v636_v35 = vpop.xlane.xlu0 %635 }
 0x79e   :  { %v637_v36 = vmul.f32 0.03125, %v636_v35 }
 0x79f   :  { %v641_v37 = vpop.xlane.xlu1 %640 }
 0x7a0   :  { %v643_v38 = vmul.f32 %v637_v36, %v637_v36  ;;  %v642_v39 = vmul.f32 0.03125, %v641_v37  ;;  %v647_v42 = vsub.f32 %v631_v25, %v637_v36 }
 0x7a2   :  { %v644_v40 = vsub.f32 %v642_v39, %v643_v38 }
 0x7a4   :  { %v645_v41 = vadd.f32 1e-05, %v644_v40 }
 0x7a6   :  { %1050 = vrsqrt.f32 %v645_v41 }
 0x7b0   :  { %v1051_v0 = vpop.eup %1050 }
 0x7b1   :  { %v648_v44 = vmul.f32 %v1051_v0, %v647_v42 }
 0x7b3   :  { %v653_v46 = vmul.f32 %v784_v43, %v648_v44 }
 0x7b5   :  { %v658_v47 = vadd.f32 %v785_v45, %v653_v46 }
 0x7b7   :  { %964 = vmatmul.mubr.msk.f32.vlgmr.msra.gmra.mrb[6].mxu0 %vm151_vm3, %v658_v47 }
 0x88a   :  { %v732_v49 = vpop.f32.mrb[6].mxu0 }
 0x88b   :  { %v733_v50 = vadd.f32 %v786_v48, %v732_v49  ;;  %v965_v51 = vpop.f32.mrb[7].mxu0 }
 0x88d   :  { %736 = vst [vmem:[%s1354_s7] sm:$0xf] %v733_v50 }

</bundles_post_ra>
